<compile_context>
chip_gen: v7x
topology: tpu7x:2x2x1
jax: 0.10.0
libtpu: 0.0.40
codegen_flags: <defaults>
</compile_context>

<pallas_src>
import numpy as np
import jax
import jax.numpy as jnp
from jax import lax
from jax.experimental import pallas as pl
from jax.experimental.pallas import tpu as pltpu

# ----------------------------- configuration --------------------------------
F_TOTAL = 24          # xtrain.size(1): total raw input columns
DOW_IDX = 3           # column holding 'dayofweek' codes (emb_mask position 0)
HOD_IDX = 4           # column holding 'hourofday' codes (emb_mask position 1)
N_DOW, DOW_EMB = 7, 3
N_HOD, HOD_EMB = 24, 5
H1, H2, H3 = 100, 40, 10

KEEP_IDX = np.array([i for i in range(F_TOTAL) if i not in (DOW_IDX, HOD_IDX)])
N_CONT = F_TOTAL - 2                      # continuous (non-embedded) features
IN_DIM = N_CONT + DOW_EMB + HOD_EMB       # Linear `input` in_features (= 30)

DOW_OH = 8                                # dow one-hot padded 7 -> 8 (sublane aligned)
F_AUG = F_TOTAL + DOW_OH + N_HOD          # 24 + 8 + 24 = 56: augmented K for layer 1

TILE_B = 4096         # default batch (lane-axis) tile; ~few MiB VMEM in f32, well under
                      # the 16 MiB (v5e) / 32 MiB (v6e, v7x) scoped VMEM defaults.


# ------------------------------ Pallas kernel --------------------------------
def _mynet_kernel(x_ref, w1_ref, w2_ref, b2_ref, w3_ref, b3_ref, w4_ref, b4_ref,
                  o_ref):
    x = x_ref[...]                                            # [F_TOTAL, TB]
    tb = x.shape[1]

    # integer codes live in two rows of x; build transposed one-hots so the
    # embedding lookups ride the single merged layer-1 matmul.
    dow = x[DOW_IDX:DOW_IDX + 1, :].astype(jnp.int32)         # [1, TB]
    hod = x[HOD_IDX:HOD_IDX + 1, :].astype(jnp.int32)         # [1, TB]
    dow_oh = (lax.broadcasted_iota(jnp.int32, (DOW_OH, tb), 0) == dow
              ).astype(jnp.float32)                           # [8, TB]  (row 7 unused)
    hod_oh = (lax.broadcasted_iota(jnp.int32, (N_HOD, tb), 0) == hod
              ).astype(jnp.float32)                           # [24, TB]

    # augmented input: 8-aligned sublane concat -> [56, TB]
    x_aug = jnp.concatenate([x, dow_oh, hod_oh], axis=0)

    # layer 1: single MXU matmul; code rows of W1aug are zero, embeddings are
    # pre-folded LUT columns, b1 is folded into the hod columns.
    h = jnp.maximum(
        jnp.dot(w1_ref[...], x_aug, preferred_element_type=jnp.float32), 0.0)

    h = jnp.maximum(
        jnp.dot(w2_ref[...], h, preferred_element_type=jnp.float32) + b2_ref[...],
        0.0)
    h = jnp.maximum(
        jnp.dot(w3_ref[...], h, preferred_element_type=jnp.float32) + b3_ref[...],
        0.0)

    logit = jnp.dot(w4_ref[...], h, preferred_element_type=jnp.float32) + b4_ref[...]
    o_ref[...] = jax.nn.sigmoid(logit)                        # [1, TB], lane-dense
    # TODO(synk): training-mode dropout (pltpu.prng_*) intentionally omitted;
    # it is identity in eval mode.  BatchNorm layers are unused in forward().


# ------------------------------ param folding --------------------------------
def fold_params(params):
    """One-time repack of the PyTorch-style parameters into the kernel layout."""
    hi = lax.Precision.HIGHEST
    w1 = params["w1"]                          # [IN_DIM, H1]: rows = [cont, dow, hod]
    w1_cont = w1[:N_CONT]
    w1_dow = w1[N_CONT:N_CONT + DOW_EMB]
    w1_hod = w1[N_CONT + DOW_EMB:]

    lut_dow = jnp.dot(params["dow_emb"], w1_dow, precision=hi)            # [7, H1]
    lut_hod = jnp.dot(params["hod_emb"], w1_hod, precision=hi) + params["b1"]  # b1 folded

    w1aug = jnp.zeros((F_AUG, H1), jnp.float32)
    w1aug = w1aug.at[KEEP_IDX].set(w1_cont)          # cont rows at original column slots
    w1aug = w1aug.at[F_TOTAL:F_TOTAL + N_DOW].set(lut_dow)     # rows 24..30
    # row 31 stays zero (dow one-hot padding row)
    w1aug = w1aug.at[F_TOTAL + DOW_OH:].set(lut_hod)           # rows 32..55

    return dict(
        w1aug_t=w1aug.T,                        # [H1, 56]
        w2t=params["w2"].T, b2=params["b2"].T,  # [H2, H1], [H2, 1]
        w3t=params["w3"].T, b3=params["b3"].T,  # [H3, H2], [H3, 1]
        w4row=params["w4"].T, b4=params["b4"],  # [1, H3],  [1, 1]
    )


# ------------------------------ full forward ---------------------------------
def _pick_tile(batch, max_tile=TILE_B):
    """Lane-aligned batch tile: <= round_up(B,128); split in two when possible so
    v7x's two TensorCores both get a grid step."""
    b128 = max(128, ((batch + 127) // 128) * 128)
    if b128 <= max_tile:
        return b128 // 2 if (b128 % 256 == 0) else b128
    return max_tile


def mynet_forward(x, kparams, max_tile=TILE_B):
    """x: [B, F_TOTAL] float32 (dow/hod columns hold integer codes as floats)."""
    B = x.shape[0]
    tile_b = _pick_tile(B, max_tile)
    grid_b = pl.cdiv(B, tile_b)
    b_pad = grid_b * tile_b

    xt = x.T                                                   # [F_TOTAL, B]
    if b_pad != B:
        # padded columns are all-zero -> code 0 (valid); their outputs are sliced off.
        xt = jnp.pad(xt, ((0, 0), (0, b_pad - B)))

    const = lambda i: (0, 0)
    resident = lambda a: pl.BlockSpec(a.shape, const)          # stays in VMEM across grid

    out = pl.pallas_call(
        _mynet_kernel,
        out_shape=jax.ShapeDtypeStruct((1, b_pad), jnp.float32),
        grid=(grid_b,),
        in_specs=[
            pl.BlockSpec((F_TOTAL, tile_b), lambda i: (0, i)),  # x: tiled over batch lanes
            resident(kparams["w1aug_t"]),
            resident(kparams["w2t"]), resident(kparams["b2"]),
            resident(kparams["w3t"]), resident(kparams["b3"]),
            resident(kparams["w4row"]), resident(kparams["b4"]),
        ],
        out_specs=pl.BlockSpec((1, tile_b), lambda i: (0, i)),  # lane-dense output row
        compiler_params=pltpu.CompilerParams(
            dimension_semantics=("parallel",)),                 # shard batch over TCs (v7x)
    )(xt, kparams["w1aug_t"],
      kparams["w2t"], kparams["b2"],
      kparams["w3t"], kparams["b3"],
      kparams["w4row"], kparams["b4"])

    return out[0, :B].reshape(B, 1)


# ------------------------------ param init -----------------------------------
def init_params(key):
    ks = jax.random.split(key, 10)

    def linear(kw, kb, fan_in, fan_out):
        bound = 1.0 / np.sqrt(fan_in)
        w = jax.random.uniform(kw, (fan_in, fan_out), jnp.float32, -bound, bound)
        b = jax.random.uniform(kb, (1, fan_out), jnp.float32, -bound, bound)
        return w, b

    w1, b1 = linear(ks[0], ks[1], IN_DIM, H1)
    w2, b2 = linear(ks[2], ks[3], H1, H2)
    w3, b3 = linear(ks[4], ks[5], H2, H3)
    w4, b4 = linear(ks[6], ks[7], H3, 1)
    dow_emb = jax.random.normal(ks[8], (N_DOW, DOW_EMB), jnp.float32)
    hod_emb = jax.random.normal(ks[9], (N_HOD, HOD_EMB), jnp.float32)
    return dict(w1=w1, b1=b1, w2=w2, b2=b2, w3=w3, b3=b3, w4=w4, b4=b4,
                dow_emb=dow_emb, hod_emb=hod_emb)


def reference_forward(x, params):
    """Plain-JAX reference following the PyTorch forward() exactly."""
    hi = lax.Precision.HIGHEST
    xc = x[:, KEEP_IDX]
    de = params["dow_emb"][x[:, DOW_IDX].astype(jnp.int32)]
    he = params["hod_emb"][x[:, HOD_IDX].astype(jnp.int32)]
    h = jnp.concatenate([xc, de, he], axis=1)
    h = jnp.maximum(jnp.dot(h, params["w1"], precision=hi) + params["b1"], 0.0)
    h = jnp.maximum(jnp.dot(h, params["w2"], precision=hi) + params["b2"], 0.0)
    h = jnp.maximum(jnp.dot(h, params["w3"], precision=hi) + params["b3"], 0.0)
    return jax.nn.sigmoid(jnp.dot(h, params["w4"], precision=hi) + params["b4"])


# --------------------------------- main ---------------------------------------
if __name__ == "__main__":
    key = jax.random.PRNGKey(0)
    k_param, k_data = jax.random.split(key, 2)

    params = init_params(k_param)
    kparams = fold_params(params)

    # B=8: single 128-wide tile (tests padding).  B=200: 2x128 tiles (tests the grid).
    for B in (8, 200):
        k_cont, k_dow, k_hod, k_data = jax.random.split(k_data, 4)
        x = jax.random.normal(k_cont, (B, F_TOTAL), jnp.float32)
        dow_codes = jax.random.randint(k_dow, (B,), 0, N_DOW).astype(jnp.float32)
        hod_codes = jax.random.randint(k_hod, (B,), 0, N_HOD).astype(jnp.float32)
        x = x.at[:, DOW_IDX].set(dow_codes).at[:, HOD_IDX].set(hod_codes)

        out = jax.block_until_ready(mynet_forward(x, kparams))
        assert out.shape == (B, 1), out.shape

        ref = reference_forward(x, params)
        np.testing.assert_allclose(np.asarray(out), np.asarray(ref),
                                   rtol=2e-3, atol=1e-3)

    print("KERNEL_OK")
</pallas_src>

<mosaic_0001>
module attributes {stable_mosaic.version = 11 : i64} {
  func.func @_mynet_kernel(%arg0: i32, %arg1: memref<24x128xf32, #tpu.memory_space<vmem>>, %arg2: memref<100x56xf32, #tpu.memory_space<vmem>>, %arg3: memref<40x100xf32, #tpu.memory_space<vmem>>, %arg4: memref<40x1xf32, #tpu.memory_space<vmem>>, %arg5: memref<10x40xf32, #tpu.memory_space<vmem>>, %arg6: memref<10x1xf32, #tpu.memory_space<vmem>>, %arg7: memref<1x10xf32, #tpu.memory_space<vmem>>, %arg8: memref<1x1xf32, #tpu.memory_space<vmem>>, %arg9: memref<1x128xf32, #tpu.memory_space<vmem>>) attributes {dimension_semantics = [#tpu.dimension_semantics<parallel>], iteration_bounds = array<i64: 1>, scalar_prefetch = 0 : i64, scratch_operands = 0 : i64, tpu.core_type = #tpu.core_type<tc>, window_params = [{transform_indices = @transform_0, window_bounds = array<i64: 24, 128>}, {pipeline_mode = #tpu.pipeline_mode<synchronous>, transform_indices = @transform_1, window_bounds = array<i64: 100, 56>}, {pipeline_mode = #tpu.pipeline_mode<synchronous>, transform_indices = @transform_2, window_bounds = array<i64: 40, 100>}, {pipeline_mode = #tpu.pipeline_mode<synchronous>, transform_indices = @transform_3, window_bounds = array<i64: 40, 1>}, {pipeline_mode = #tpu.pipeline_mode<synchronous>, transform_indices = @transform_4, window_bounds = array<i64: 10, 40>}, {pipeline_mode = #tpu.pipeline_mode<synchronous>, transform_indices = @transform_5, window_bounds = array<i64: 10, 1>}, {pipeline_mode = #tpu.pipeline_mode<synchronous>, transform_indices = @transform_6, window_bounds = array<i64: 1, 10>}, {pipeline_mode = #tpu.pipeline_mode<synchronous>, transform_indices = @transform_7, window_bounds = array<i64: 1, 1>}, {transform_indices = @transform_8, window_bounds = array<i64: 1, 128>}]} {
    %c0 = arith.constant 0 : index
    %c0_0 = arith.constant 0 : index
    %0 = vector.load %arg1[%c0, %c0_0] : memref<24x128xf32, #tpu.memory_space<vmem>>, vector<24x128xf32>
    %1 = vector.extract_strided_slice %0 {offsets = [3, 0], sizes = [1, 128], strides = [1, 1]} : vector<24x128xf32> to vector<1x128xf32>
    %2 = arith.fptosi %1 : vector<1x128xf32> to vector<1x128xi32>
    %3 = vector.extract_strided_slice %0 {offsets = [4, 0], sizes = [1, 128], strides = [1, 1]} : vector<24x128xf32> to vector<1x128xf32>
    %4 = arith.fptosi %3 : vector<1x128xf32> to vector<1x128xi32>
    %5 = tpu.iota {dimensions = array<i32: 0>} : vector<8x128xi32>
    %6 = vector.broadcast %2 : vector<1x128xi32> to vector<8x128xi32>
    %7 = arith.cmpi eq, %5, %6 : vector<8x128xi32>
    %8 = arith.extui %7 : vector<8x128xi1> to vector<8x128xi32>
    %9 = arith.sitofp %8 : vector<8x128xi32> to vector<8x128xf32>
    %10 = tpu.iota {dimensions = array<i32: 0>} : vector<24x128xi32>
    %11 = vector.broadcast %4 : vector<1x128xi32> to vector<24x128xi32>
    %12 = arith.cmpi eq, %10, %11 : vector<24x128xi32>
    %13 = arith.extui %12 : vector<24x128xi1> to vector<24x128xi32>
    %14 = arith.sitofp %13 : vector<24x128xi32> to vector<24x128xf32>
    %15 = tpu.concatenate %0, %9, %14 in 0 : vector<24x128xf32>, vector<8x128xf32>, vector<24x128xf32> -> vector<56x128xf32>
    %c0_1 = arith.constant 0 : index
    %c0_2 = arith.constant 0 : index
    %16 = vector.load %arg2[%c0_1, %c0_2] : memref<100x56xf32, #tpu.memory_space<vmem>>, vector<100x56xf32>
    %cst = arith.constant dense<0.000000e+00> : vector<100x128xf32>
    %17 = tpu.matmul %16, %15, %cst {dimension_numbers = #tpu.dot_dimension_numbers<[1], [0], [0], [1], [0, 0, 1, 1], [], []>} : vector<100x56xf32>, vector<56x128xf32>, vector<100x128xf32> -> vector<100x128xf32>
    %cst_3 = arith.constant 0.000000e+00 : f32
    %18 = vector.broadcast %cst_3 : f32 to vector<100x128xf32>
    %19 = arith.maximumf %17, %18 : vector<100x128xf32>
    %c0_4 = arith.constant 0 : index
    %c0_5 = arith.constant 0 : index
    %20 = vector.load %arg3[%c0_4, %c0_5] : memref<40x100xf32, #tpu.memory_space<vmem>>, vector<40x100xf32>
    %cst_6 = arith.constant dense<0.000000e+00> : vector<40x128xf32>
    %21 = tpu.matmul %20, %19, %cst_6 {dimension_numbers = #tpu.dot_dimension_numbers<[1], [0], [0], [1], [0, 0, 1, 1], [], []>} : vector<40x100xf32>, vector<100x128xf32>, vector<40x128xf32> -> vector<40x128xf32>
    %c0_7 = arith.constant 0 : index
    %c0_8 = arith.constant 0 : index
    %22 = vector.load %arg4[%c0_7, %c0_8] : memref<40x1xf32, #tpu.memory_space<vmem>>, vector<40x1xf32>
    %23 = vector.broadcast %22 : vector<40x1xf32> to vector<40x128xf32>
    %24 = arith.addf %21, %23 : vector<40x128xf32>
    %cst_9 = arith.constant 0.000000e+00 : f32
    %25 = vector.broadcast %cst_9 : f32 to vector<40x128xf32>
    %26 = arith.maximumf %24, %25 : vector<40x128xf32>
    %c0_10 = arith.constant 0 : index
    %c0_11 = arith.constant 0 : index
    %27 = vector.load %arg5[%c0_10, %c0_11] : memref<10x40xf32, #tpu.memory_space<vmem>>, vector<10x40xf32>
    %cst_12 = arith.constant dense<0.000000e+00> : vector<10x128xf32>
    %28 = tpu.matmul %27, %26, %cst_12 {dimension_numbers = #tpu.dot_dimension_numbers<[1], [0], [0], [1], [0, 0, 1, 1], [], []>} : vector<10x40xf32>, vector<40x128xf32>, vector<10x128xf32> -> vector<10x128xf32>
    %c0_13 = arith.constant 0 : index
    %c0_14 = arith.constant 0 : index
    %29 = vector.load %arg6[%c0_13, %c0_14] : memref<10x1xf32, #tpu.memory_space<vmem>>, vector<10x1xf32>
    %30 = vector.broadcast %29 : vector<10x1xf32> to vector<10x128xf32>
    %31 = arith.addf %28, %30 : vector<10x128xf32>
    %cst_15 = arith.constant 0.000000e+00 : f32
    %32 = vector.broadcast %cst_15 : f32 to vector<10x128xf32>
    %33 = arith.maximumf %31, %32 : vector<10x128xf32>
    %c0_16 = arith.constant 0 : index
    %c0_17 = arith.constant 0 : index
    %34 = vector.load %arg7[%c0_16, %c0_17] : memref<1x10xf32, #tpu.memory_space<vmem>>, vector<1x10xf32>
    %cst_18 = arith.constant dense<0.000000e+00> : vector<1x128xf32>
    %35 = tpu.matmul %34, %33, %cst_18 {dimension_numbers = #tpu.dot_dimension_numbers<[1], [0], [0], [1], [0, 0, 1, 1], [], []>} : vector<1x10xf32>, vector<10x128xf32>, vector<1x128xf32> -> vector<1x128xf32>
    %c0_19 = arith.constant 0 : index
    %c0_20 = arith.constant 0 : index
    %36 = vector.load %arg8[%c0_19, %c0_20] : memref<1x1xf32, #tpu.memory_space<vmem>>, vector<1x1xf32>
    %37 = vector.broadcast %36 : vector<1x1xf32> to vector<1x128xf32>
    %38 = arith.addf %35, %37 : vector<1x128xf32>
    %39 = arith.negf %38 : vector<1x128xf32>
    %40 = math.exp %39 : vector<1x128xf32>
    %cst_21 = arith.constant 1.000000e+00 : f32
    %41 = vector.broadcast %cst_21 : f32 to vector<1x128xf32>
    %42 = arith.addf %41, %40 : vector<1x128xf32>
    %43 = arith.divf %41, %42 : vector<1x128xf32>
    %c0_22 = arith.constant 0 : index
    %c0_23 = arith.constant 0 : index
    %44 = vector.load %arg9[%c0_22, %c0_23] : memref<1x128xf32, #tpu.memory_space<vmem>>, vector<1x128xf32>
    tpu.vector_store %arg9[%c0_22, %c0_23], %43 {strides = array<i32>} : memref<1x128xf32, #tpu.memory_space<vmem>>, vector<1x128xf32>,
    return
  }
  func.func @transform_0(%arg0: i32) -> (i32, i32) {
    %c0_i32 = arith.constant 0 : i32
    %c0_i32_0 = arith.constant 0 : i32
    return %c0_i32, %arg0 : i32, i32
  }
  func.func @transform_1(%arg0: i32) -> (i32, i32) {
    %c0_i32 = arith.constant 0 : i32
    %c0_i32_0 = arith.constant 0 : i32
    %c0_i32_1 = arith.constant 0 : i32
    return %c0_i32, %c0_i32_0 : i32, i32
  }
  func.func @transform_2(%arg0: i32) -> (i32, i32) {
    %c0_i32 = arith.constant 0 : i32
    %c0_i32_0 = arith.constant 0 : i32
    %c0_i32_1 = arith.constant 0 : i32
    return %c0_i32, %c0_i32_0 : i32, i32
  }
  func.func @transform_3(%arg0: i32) -> (i32, i32) {
    %c0_i32 = arith.constant 0 : i32
    %c0_i32_0 = arith.constant 0 : i32
    %c0_i32_1 = arith.constant 0 : i32
    return %c0_i32, %c0_i32_0 : i32, i32
  }
  func.func @transform_4(%arg0: i32) -> (i32, i32) {
    %c0_i32 = arith.constant 0 : i32
    %c0_i32_0 = arith.constant 0 : i32
    %c0_i32_1 = arith.constant 0 : i32
    return %c0_i32, %c0_i32_0 : i32, i32
  }
  func.func @transform_5(%arg0: i32) -> (i32, i32) {
    %c0_i32 = arith.constant 0 : i32
    %c0_i32_0 = arith.constant 0 : i32
    %c0_i32_1 = arith.constant 0 : i32
    return %c0_i32, %c0_i32_0 : i32, i32
  }
  func.func @transform_6(%arg0: i32) -> (i32, i32) {
    %c0_i32 = arith.constant 0 : i32
    %c0_i32_0 = arith.constant 0 : i32
    %c0_i32_1 = arith.constant 0 : i32
    return %c0_i32, %c0_i32_0 : i32, i32
  }
  func.func @transform_7(%arg0: i32) -> (i32, i32) {
    %c0_i32 = arith.constant 0 : i32
    %c0_i32_0 = arith.constant 0 : i32
    %c0_i32_1 = arith.constant 0 : i32
    return %c0_i32, %c0_i32_0 : i32, i32
  }
  func.func @transform_8(%arg0: i32) -> (i32, i32) {
    %c0_i32 = arith.constant 0 : i32
    %c0_i32_0 = arith.constant 0 : i32
    return %c0_i32, %arg0 : i32, i32
  }
}

</mosaic_0001>

<bundles_post_ra>
// kernel: tpu_custom_call.1
= control target key start
LH: loop header
LB: loop body
LE: loop exit
PB: predicated region body
PF: predicated region fallthrough
CT: control target
= control target key end

     0   :  { %s1125_s0 = inlined_call_operand.vmem [shape: f32[24,128], index: 0, kind: input, shape index: {}]   ;;  %s1126_s1 = inlined_call_operand.vmem [shape: f32[100,56], index: 1, kind: input, shape index: {}]   ;;  %s1127_s2 = inlined_call_operand.vmem [shape: f32[40,100], index: 2, kind: input, shape index: {}]   ;;  %s1128_s3 = inlined_call_operand.vmem [shape: f32[40,1], index: 3, kind: input, shape index: {}]   ;;  %s1129_s4 = inlined_call_operand.vmem [shape: f32[10,40], index: 4, kind: input, shape index: {}]   ;;  %s1130_s5 = inlined_call_operand.vmem [shape: f32[10,1], index: 5, kind: input, shape index: {}]   ;;  %s1131_s6 = inlined_call_operand.vmem [shape: f32[1,10], index: 6, kind: input, shape index: {}]   ;;  %s1132_s7 = inlined_call_operand.<no memory space> [shape: f32[1,1], index: 7, kind: input, shape index: {}]   ;;  %s1133_s8 = inlined_call_operand.hbm [shape: f32[1,128], index: 8, kind: output, shape index: {}]  }
   0x1   :  { %v13_v0 = vstv %s1132_s7 }
   0x2   :  { %14 = vst [vmem:[#allocation2] sm:$0x1] %v13_v0 }
   0x3   :  { %v32_v1 = vld [vmem:[%s1125_s0] sm:$0xff]  ;;  %v33_v2 = vld [vmem:[%s1125_s0 + $0x8] sm:$0xff]  ;;  %v36_v3 = vlaneseq  ;;  %v888_v4 = vmov 0.0|0.0   ;;  %v34_v9 = vld [vmem:[%s1125_s0 + $0x10] sm:$0xff]  ;;  %vm889_vm0 = vmmov 0   ;;  %v890_v10 = vmov 0.0  }
   0x4   :  { %808 = vmatprep.subr.bf16.mxu0 %v888_v4  ;;  %v848_v5 = vtrunc.f32 %v32_v1  ;;  %v809_v6 = vpack.c.bf16 %v33_v2, %v32_v1  ;;  %818 = vmatprep.subr.bf16.mxu1 %v888_v4  ;;  %v891_v16 = vmov 1.0  }
   0x5   :  { %v952_v7 = vshrl.u32 %v36_v3, 7  ;;  %708 = vmatprep.mubr.msk.f32.mxu0 %vm889_vm0, %v890_v10  ;;  %773 = vmatprep.mubr.msk.f32.mxu1 %vm889_vm0, %v890_v10  ;;  %v812_v17 = vpack.c.bf16 %v891_v16, %v34_v9 }
   0x6   :  { %v849_v8 = vcvt.f32.s32 %v848_v5  ;;  %810 = vmatpush3.bf16.msra.mxu0 %v809_v6 }
   0x7   :  { %v40_v11 = vsub.s32 3, %v952_v7  ;;  %v49_v12 = vsub.s32 4, %v952_v7  ;;  %811 = vmatprep.subr.bf16.mxu0 %v888_v4  ;;  %v45_v13 = vadd.s32 8, %v952_v7 }
   0x9   :  { %v41_v14 = vrot.slane %v849_v8, %v40_v11  ;;  %v50_v15 = vrot.slane %v849_v8, %v49_v12 }
   0xa   :  { %15 = vsyncpa [#allocation4], 0  ;;  %vm892_vm4 = vmmov 1   ;;  %v46_v18 = vadd.s32 16, %v952_v7  ;;  %v893_v19 = vmov 1.0|1.0  }
   0xb   :  { %vm42_vm1 = vcmp.eq.s32.totalorder %v952_v7, %v41_v14  ;;  %vm51_vm2 = vcmp.eq.s32.totalorder %v952_v7, %v50_v15  ;;  %vm52_vm3 = vcmp.eq.s32.totalorder %v45_v13, %v50_v15  ;;  %v60_v20 = vld [vmem:[%s1126_s1] sm:$0xff]  ;;  %vm73_vm8 = vcmask 457728   ;;  %v61_v21 = vld [vmem:[%s1126_s1 + $0x8] sm:$0xff]  ;;  %v62_v22 = vld [vmem:[%s1126_s1 + $0x10] sm:$0xff]  ;;  %s895_s14 = smov [#allocation3]  }
   0xc   :  { %vm813_vm5 = vmpackc.low %vm42_vm1, %vm892_vm4  ;;  %vm53_vm7 = vcmp.eq.s32.totalorder %v46_v18, %v50_v15  ;;  %v63_v23 = vld [vmem:[%s1126_s1 + $0x18] sm:$0xff]  ;;  %v64_v24 = vld [vmem:[%s1126_s1 + $0x20] sm:$0xff]  ;;  %v894_v35 = vmov 0   ;;  %vm307_vm9 = vcmask 1043456   ;;  %vm291_vm10 = vcmask 818176   ;;  %s606_s15 = sshll.u32 %s895_s14, 4  ;;  %s607_s15 = int_to_ptr.vmem [resolvable:$true] %s606_s15 }
   0xd   :  { %814 = vmatpush3.bf16.msk.msra.mxu0 %vm813_vm5, %v812_v17  ;;  %vm816_vm6 = vmpackc.low %vm52_vm3, %vm51_vm2  ;;  %v65_v25 = vld [vmem:[%s1126_s1 + $0x28] sm:$0xff]  ;;  %v66_v26 = vld [vmem:[%s1126_s1 + $0x30] sm:$0xff]  ;;  %858 = vset.pattern.permute.xlu0 %v894_v35  ;;  %vm420_vm11 = vcmask 326656   ;;  %vm519_vm12 = vcmask 1041408   ;;  %vm515_vm14 = vcmask 80896   ;;  %s868_s16 = scalar_lea.vmem %s607_s15, 32  ;;  %p869_p1 = scmp.lt.s32.totalorder %s607_s15, %s607_s15 }
   0xe   :  { %815 = vmatprep.subr.bf16.mxu0 %v888_v4  ;;  %v67_v27 = vld [vmem:[%s1126_s1 + $0x38] sm:$0xff]  ;;  %v68_v28 = vld [vmem:[%s1126_s1 + $0x40] sm:$0xff]  ;;  %v69_v29 = vld [vmem:[%s1126_s1 + $0x48] sm:$0xff]  ;;  %859 = vset.pattern.permute.xlu1 %v894_v35 }
   0xf   :  { %v70_v30 = vld [vmem:[%s1126_s1 + $0x50] sm:$0xff]  ;;  %v71_v31 = vld [vmem:[%s1126_s1 + $0x58] sm:$0xff]  ;;  %v72_v32 = vld [vmem:[%s1126_s1 + $0x60] sm:$0xf] }
  0x10   :  { %v261_v33 = vld [vmem:[%s1128_s3] sm:$0xff]  ;;  %v263_v34 = vld [vmem:[%s1128_s3 + $0x10] sm:$0xff]  ;;  %v262_v36 = vld [vmem:[%s1128_s3 + $0x8] sm:$0xff] }
  0x11   :  { %817 = vmatpush3.bf16.msk.msra.mxu0 %vm816_vm6, %v893_v19  ;;  %268 = vperm.xlu0 %858, %v261_v33   ;;  %v264_v37 = vld [vmem:[%s1128_s3 + $0x18] sm:$0xff]  ;;  %v265_v38 = vld [vmem:[%s1128_s3 + $0x20] sm:$0xff]  ;;  %v409_v40 = vld [vmem:[%s1130_s5 + $0x8] sm:$0x3] }
  0x12   :  { %706 = vmatprep.subr.mxu0 %v890_v10  ;;  %278 = vperm.xlu1 %859, %v263_v34   ;;  %v408_v39 = vld [vmem:[%s1130_s5] sm:$0xff]  ;;  %vm846_vm13 = vmpackc.low %vm519_vm12, %vm892_vm4 }
  0x13   :  { %v505_v41 = vld [vmem:[#allocation2] sm:$0x1] }
  0x15   :  { %707 = vmatpush3.msk.msra.mxu0 %vm53_vm7, %v891_v16  ;;  %273 = vperm.xlu0 %858, %v262_v36  }
  0x16   :  { %709 = vmatmul.mubr.msk.f32.vlgmr.msra.gmra.mrb[0].mxu0 %vm73_vm8, %v60_v20  ;;  %283 = vperm.xlu1 %859, %v264_v37  }
  0x17   :  { %711 = vmatprep.mubr.msk.f32.mxu0 %vm889_vm0, %v890_v10 }
  0x19   :  { %288 = vperm.xlu0 %858, %v265_v38  }
  0x1a   :  { %712 = vmatmul.mubr.msk.f32.gmra.mrb[2].mxu0 %vm73_vm8, %v61_v21  ;;  %412 = vperm.xlu1 %859, %v408_v39  }
  0x1b   :  { %714 = vmatprep.mubr.msk.f32.mxu0 %vm889_vm0, %v890_v10 }
  0x1d   :  { %417 = vperm.xlu0 %858, %v409_v40  }
  0x1e   :  { %715 = vmatmul.mubr.msk.f32.gmra.mrb[4].mxu0 %vm73_vm8, %v62_v22  ;;  %508 = vperm.xlu1 %859, %v505_v41  }
  0x1f   :  { %717 = vmatprep.mubr.msk.f32.mxu0 %vm889_vm0, %v890_v10 }
  0x22   :  { %718 = vmatmul.mubr.msk.f32.gmra.mrb[6].mxu0 %vm73_vm8, %v63_v23 }
  0x23   :  { %720 = vmatprep.mubr.msk.f32.mxu0 %vm889_vm0, %v890_v10 }
  0x26   :  { %721 = vmatmul.mubr.msk.f32.gmra.mrb[8].mxu0 %vm73_vm8, %v64_v24 }
  0x27   :  { %723 = vmatprep.mubr.msk.f32.mxu0 %vm889_vm0, %v890_v10 }
  0x2a   :  { %724 = vmatmul.mubr.msk.f32.gmra.mrb[10].mxu0 %vm73_vm8, %v65_v25 }
  0x2b   :  { %726 = vmatprep.mubr.msk.f32.mxu0 %vm889_vm0, %v890_v10 }
  0x2e   :  { %727 = vmatmul.mubr.msk.f32.gmra.mrb[12].mxu0 %vm73_vm8, %v66_v26  ;;  %v256_v26 = vld [vmem:[%s1127_s2] sm:$0xff] }
  0x2f   :  { %729 = vmatprep.mubr.msk.f32.mxu0 %vm889_vm0, %v890_v10 }
  0x32   :  { %730 = vmatmul.mubr.msk.f32.gmra.mrb[14].mxu0 %vm73_vm8, %v67_v27  ;;  %v257_v27 = vld [vmem:[%s1127_s2 + $0x8] sm:$0xff] }
  0x33   :  { %732 = vmatprep.mubr.msk.f32.mxu0 %vm889_vm0, %v890_v10 }
  0x36   :  { %733 = vmatmul.mubr.msk.f32.gmra.mrb[16].mxu0 %vm73_vm8, %v68_v28  ;;  %v258_v28 = vld [vmem:[%s1127_s2 + $0x10] sm:$0xff] }
  0x37   :  { %735 = vmatprep.mubr.msk.f32.mxu0 %vm889_vm0, %v890_v10 }
  0x3a   :  { %736 = vmatmul.mubr.msk.f32.gmra.mrb[18].mxu0 %vm73_vm8, %v69_v29  ;;  %v259_v29 = vld [vmem:[%s1127_s2 + $0x18] sm:$0xff] }
  0x3b   :  { %738 = vmatprep.mubr.msk.f32.mxu0 %vm889_vm0, %v890_v10 }
  0x3e   :  { %739 = vmatmul.mubr.msk.f32.gmra.mrb[20].mxu0 %vm73_vm8, %v70_v30  ;;  %v260_v30 = vld [vmem:[%s1127_s2 + $0x20] sm:$0xff] }
  0x3f   :  { %741 = vmatprep.mubr.msk.f32.mxu0 %vm889_vm0, %v890_v10 }
  0x42   :  { %742 = vmatmul.mubr.msk.f32.gmra.mrb[22].mxu0 %vm73_vm8, %v71_v31  ;;  %v406_v31 = vld [vmem:[%s1129_s4] sm:$0xff] }
  0x43   :  { %744 = vmatprep.mubr.msk.f32.mxu0 %vm889_vm0, %v890_v10 }
  0x46   :  { %745 = vmatmul.mubr.msk.f32.gmra.mrb[24].mxu0 %vm73_vm8, %v72_v32 }
  0x90   :  { %v269_v32 = vpop.permute.xlu0 %268 }
  0x91   :  { %v279_v40 = vpop.permute.xlu1 %278 }
  0x94   :  { %v274_v36 = vpop.permute.xlu0 %273 }
  0xe9   :  { %v179_v42 = vpop.f32.mrb[0].mxu0 }
  0xea   :  { %v710_v43 = vpop.f32.mrb[1].mxu0  ;;  %v243_v45 = vmax.f32 %v179_v42, 0.0 }
  0xed   :  { %v184_v44 = vpop.f32.mrb[2].mxu0 }
  0xee   :  { %v244_v46 = vmax.f32 %v184_v44, 0.0  ;;  %v713_v47 = vpop.f32.mrb[3].mxu0 }
  0xef   :  { %v284_v47 = vpop.permute.xlu1 %283 }
  0xf0   :  { %v819_v48 = vpack.c.bf16 %v244_v46, %v243_v45 }
  0xf1   :  { %v189_v49 = vpop.f32.mrb[4].mxu0 }
  0xf2   :  { %v716_v50 = vpop.f32.mrb[5].mxu0  ;;  %820 = vmatpush3.bf16.msra.mxu1 %v819_v48  ;;  %v245_v52 = vmax.f32 %v189_v49, 0.0 }
  0xf3   :  { %821 = vmatprep.subr.bf16.mxu1 %v888_v4 }
  0xf5   :  { %v194_v51 = vpop.f32.mrb[6].mxu0 }
  0xf6   :  { %v246_v53 = vmax.f32 %v194_v51, 0.0  ;;  %v719_v54 = vpop.f32.mrb[7].mxu0 }
  0xf8   :  { %v822_v55 = vpack.c.bf16 %v246_v53, %v245_v52  ;;  %v289_v53 = vpop.permute.xlu0 %288 }
  0xf9   :  { %v199_v56 = vpop.f32.mrb[8].mxu0 }
  0xfa   :  { %v722_v57 = vpop.f32.mrb[9].mxu0  ;;  %823 = vmatpush3.bf16.msra.mxu1 %v822_v55  ;;  %v247_v59 = vmax.f32 %v199_v56, 0.0 }
  0xfb   :  { %824 = vmatprep.subr.bf16.mxu1 %v888_v4 }
  0xfd   :  { %v204_v58 = vpop.f32.mrb[10].mxu0 }
  0xfe   :  { %v248_v60 = vmax.f32 %v204_v58, 0.0  ;;  %v725_v61 = vpop.f32.mrb[11].mxu0 }
 0x100   :  { %v825_v62 = vpack.c.bf16 %v248_v60, %v247_v59  ;;  %v407_v59 = vld [vmem:[%s1129_s4 + $0x8] sm:$0x3]  ;;  %v418_v60 = vpop.permute.xlu0 %417 }
 0x101   :  { %v209_v63 = vpop.f32.mrb[12].mxu0 }
 0x102   :  { %v728_v0 = vpop.f32.mrb[13].mxu0  ;;  %826 = vmatpush3.bf16.msra.mxu1 %v825_v62  ;;  %v249_v2 = vmax.f32 %v209_v63, 0.0  ;;  %v413_v62 = vpop.permute.xlu1 %412 }
 0x103   :  { %827 = vmatprep.subr.bf16.mxu1 %v888_v4 }
 0x105   :  { %v214_v1 = vpop.f32.mrb[14].mxu0 }
 0x106   :  { %v250_v3 = vmax.f32 %v214_v1, 0.0  ;;  %v731_v5 = vpop.f32.mrb[15].mxu0 }
 0x108   :  { %v828_v6 = vpack.c.bf16 %v250_v3, %v249_v2 }
 0x109   :  { %v219_v8 = vpop.f32.mrb[16].mxu0 }
 0x10a   :  { %v734_v9 = vpop.f32.mrb[17].mxu0  ;;  %829 = vmatpush3.bf16.msra.mxu1 %v828_v6  ;;  %v251_v12 = vmax.f32 %v219_v8, 0.0  ;;  %v509_v6 = vpop.permute.xlu1 %508 }
 0x10b   :  { %830 = vmatprep.subr.bf16.mxu1 %v888_v4 }
 0x10d   :  { %v224_v11 = vpop.f32.mrb[18].mxu0 }
 0x10e   :  { %v252_v13 = vmax.f32 %v224_v11, 0.0  ;;  %v737_v14 = vpop.f32.mrb[19].mxu0 }
 0x110   :  { %v831_v15 = vpack.c.bf16 %v252_v13, %v251_v12 }
 0x111   :  { %v229_v16 = vpop.f32.mrb[20].mxu0 }
 0x112   :  { %v740_v17 = vpop.f32.mrb[21].mxu0  ;;  %832 = vmatpush3.bf16.msra.mxu1 %v831_v15  ;;  %v253_v19 = vmax.f32 %v229_v16, 0.0 }
 0x113   :  { %833 = vmatprep.subr.bf16.mxu1 %v888_v4 }
 0x115   :  { %v234_v18 = vpop.f32.mrb[22].mxu0 }
 0x116   :  { %v254_v20 = vmax.f32 %v234_v18, 0.0  ;;  %v743_v21 = vpop.f32.mrb[23].mxu0 }
 0x118   :  { %v834_v22 = vpack.c.bf16 %v254_v20, %v253_v19 }
 0x119   :  { %v239_v23 = vpop.f32.mrb[24].mxu0 }
 0x11a   :  { %v255_v24 = vmax.f32 %v239_v23, 0.0  ;;  %835 = vmatpush3.bf16.msra.mxu1 %v834_v22  ;;  %v746_v25 = vpop.f32.mrb[25].mxu0 }
 0x11b   :  { %771 = vmatprep.subr.mxu1 %v890_v10 }
 0x11e   :  { %772 = vmatpush3.msk.msra.mxu1 %vm307_vm9, %v255_v24 }
 0x11f   :  { %774 = vmatmul.mubr.msk.f32.vlgmr.msra.gmra.mrb[0].mxu1 %vm291_vm10, %v256_v26 }
 0x120   :  { %776 = vmatprep.mubr.msk.f32.mxu1 %vm889_vm0, %v890_v10 }
 0x123   :  { %777 = vmatmul.mubr.msk.f32.gmra.mrb[2].mxu1 %vm291_vm10, %v257_v27 }
 0x124   :  { %779 = vmatprep.mubr.msk.f32.mxu1 %vm889_vm0, %v890_v10 }
 0x127   :  { %780 = vmatmul.mubr.msk.f32.gmra.mrb[4].mxu1 %vm291_vm10, %v258_v28 }
 0x128   :  { %782 = vmatprep.mubr.msk.f32.mxu1 %vm889_vm0, %v890_v10 }
 0x12b   :  { %783 = vmatmul.mubr.msk.f32.gmra.mrb[6].mxu1 %vm291_vm10, %v259_v29 }
 0x12c   :  { %785 = vmatprep.mubr.msk.f32.mxu1 %vm889_vm0, %v890_v10 }
 0x12f   :  { %786 = vmatmul.mubr.msk.f32.gmra.mrb[8].mxu1 %vm291_vm10, %v260_v30 }
 0x130   :  { %798 = vmatprep.mubr.msk.f32.mxu1 %vm420_vm11, %v406_v31 }
 0x1f2   :  { %v377_v33 = vpop.f32.mrb[0].mxu1 }
 0x1f3   :  { %v775_v34 = vpop.f32.mrb[1].mxu1  ;;  %v378_v35 = vadd.f32 %v377_v33, %v269_v32 }
 0x1f5   :  { %v401_v41 = vmax.f32 %v378_v35, 0.0 }
 0x1f6   :  { %v382_v37 = vpop.f32.mrb[2].mxu1 }
 0x1f7   :  { %v383_v38 = vadd.f32 %v382_v37, %v274_v36  ;;  %v778_v39 = vpop.f32.mrb[3].mxu1 }
 0x1f9   :  { %v402_v42 = vmax.f32 %v383_v38, 0.0 }
 0x1fa   :  { %v387_v43 = vpop.f32.mrb[4].mxu1 }
 0x1fb   :  { %v836_v44 = vpack.c.bf16 %v402_v42, %v401_v41  ;;  %v781_v45 = vpop.f32.mrb[5].mxu1  ;;  %v388_v46 = vadd.f32 %v387_v43, %v279_v40 }
 0x1fd   :  { %837 = vmatprep.subr.bf16.mxu1 %v836_v44  ;;  %v403_v51 = vmax.f32 %v388_v46, 0.0 }
 0x1fe   :  { %v392_v48 = vpop.f32.mrb[6].mxu1  ;;  %839 = vmatpush3.bf16.msra.mxu1 %v836_v44 }
 0x1ff   :  { %v393_v49 = vadd.f32 %v392_v48, %v284_v47  ;;  %v784_v50 = vpop.f32.mrb[7].mxu1 }
 0x201   :  { %v404_v52 = vmax.f32 %v393_v49, 0.0 }
 0x202   :  { %v397_v54 = vpop.f32.mrb[8].mxu1 }
 0x203   :  { %v840_v55 = vpack.c.bf16 %v404_v52, %v403_v51  ;;  %v398_v56 = vadd.f32 %v397_v54, %v289_v53  ;;  %v787_v57 = vpop.f32.mrb[9].mxu1 }
 0x205   :  { %v405_v58 = vmax.f32 %v398_v56, 0.0  ;;  %841 = vmatprep.subr.bf16.mxu1 %v840_v55 }
 0x206   :  { %843 = vmatpush3.bf16.msra.mxu1 %v840_v55 }
 0x207   :  { %796 = vmatprep.subr.mxu1 %v405_v58 }
 0x20a   :  { %797 = vmatpush3.msra.mxu1 %v405_v58 }
 0x20b   :  { %799 = vmatmul.mubr.msk.f32.vlgmr.msra.gmra.mrb[10].mxu1 %vm420_vm11, %v407_v59  ;;  %844 = vmatprep.subr.bf16.mxu1 %v888_v4  ;;  %v504_v4 = vld [vmem:[%s1131_s6] sm:$0x1]  ;;  %s864_s6 = scalar_lea.vmem %s607_s15, 16 }
 0x20c   :  { %805 = vmatprep.mubr.msk.f32.mxu1 %vm889_vm0, %v890_v10  ;;  %v513_v10 = vsub.s32 0, %v952_v7  ;;  %p865_p0 = scmp.ne.s32.totalorder %s607_s15, %s864_s6  ;;  %p870_p2 = scmp.lt.s32.totalorder %s868_s16, %s864_s6 }
 0x20e   :  { %v514_v8 = vrot.slane %v509_v6, %v513_v10  ;;  %p871_p3 = por %p870_p2, %p869_p1 }
 0x210   :  { %p872_p4 = pnand %p871_p3, %p865_p0 }
 0x2de   :  { %v800_v61 = vpop.f32.mrb[10].mxu1 }
 0x2df   :  { %v499_v63 = vadd.f32 %v800_v61, %v418_v60  ;;  %v493_v0 = vpop.f32.mrb[11].mxu1 }
 0x2e0   :  { %v494_v1 = vadd.f32 %v493_v0, %v413_v62 }
 0x2e1   :  { %v503_v2 = vmax.f32 %v499_v63, 0.0 }
 0x2e2   :  { %v502_v3 = vmax.f32 %v494_v1, 0.0 }
 0x2e4   :  { %v845_v5 = vpack.c.bf16 %v503_v2, %v502_v3 }
 0x2e6   :  { %847 = vmatpush3.bf16.msk.msra.mxu1 %vm846_vm13, %v845_v5 }
 0x2e9   :  { %806 = vmatmul.mubr.msk.f32.vlgmr.msra.gmra.mrb[12].mxu1 %vm515_vm14, %v504_v4 }
 0x3bc   :  { %v589_v9 = vpop.f32.mrb[12].mxu1 }
 0x3bd   :  { %v590_v11 = vadd.f32 %v589_v9, %v514_v8  ;;  %v807_v12 = vpop.f32.mrb[13].mxu1 }
 0x3bf   :  { %v645_v13 = vmul.f32 -1.442695, %v590_v11 }
 0x3c1   :  { %860 = vpow2.f32 %v645_v13 }
 0x3cb   :  { %v861_v14 = vpop.eup %860 }
 0x3cc   :  { %v596_v15 = vadd.f32 1.0, %v861_v14 }
 0x3ce   :  { %862 = vrcp.f32 %v596_v15 }
 0x3d8   :  { %v863_v16 = vpop.eup %862 }
 0x3d9   :  { %599 = vst [vmem:[#allocation3] sm:$0x1] %v863_v16 }
 0x3da   :  { %875 = shalt.err (!%p872_p4)
}
 0x3db   :  { %s876_s1 = scalar_lea.hbm %s1133_s8, 16 }
 0x3dc   :  { %p877_p5 = scmp.ne.s32.totalorder %s1133_s8, %s876_s1  ;;  %p880_p6 = scmp.lt.u32.totalorder %s876_s1, %s1133_s8 }
 0x3de   :  { %p882_p7 = pnand %p880_p6, %p877_p5 }
 0x3e0   :  { %885 = shalt.err (!%p882_p7)
}
 0x3e1   :  { %609 = dma.vmem_to_hbm [thread:$0]  %s607_s15, 16, %s1133_s8, [#allocation4]  }
 0x3e2   :  { %886 = dma.done.wait [#allocation4], 16  }
 0x3e3   :  { %887 = vsyncadd [#allocation4], 4294967280 }
 0x3e4   :  { %613 = vsyncpa [#allocation4], 1 }

</bundles_post_ra>
